<compile_context>
chip_gen: v5e
topology: v5e:2x2
jax: 0.10.0
libtpu: 0.0.40
codegen_flags: <defaults>
</compile_context>

<pallas_src>
import jax
import jax.numpy as jnp
from jax.experimental import pallas as pl
from jax.experimental.pallas import tpu as pltpu

MIN_TILE = 1024          # smallest batch tile (amortize ~0.35us/step overhead)
MAX_TILE = 8192          # largest batch tile (keep double-buffered tiles tiny)
SINGLE_SHOT_MAX = 2048   # below this, skip the grid/pipeline entirely


def mlp_kernel(x_ref, w1_ref, b1_ref, w2_ref, b2_ref, o_ref):
    # fc1 + relu
    h = jnp.dot(x_ref[...], w1_ref[...], preferred_element_type=jnp.float32)
    h = jnp.maximum(h + b1_ref[...], 0.0)          # (B, H) + (1, H) broadcast
    # fc2 + relu
    y = jnp.dot(h, w2_ref[...], preferred_element_type=jnp.float32)
    y = jnp.maximum(y + b2_ref[...], 0.0)          # (B, D_out) + (1, D_out)
    # sigmoid: y >= 0 after relu so exp(-y) <= 1 (numerically safe).
    # Exact divide: kernel is memory-bound, the divide hides under DMA, and
    # it keeps bit-level-ish parity with the PyTorch reference.
    o_ref[...] = 1.0 / (1.0 + jnp.exp(-y))


def _row_tile(batch):
    """Batch rows per grid step: big enough to amortize per-step pipeline
    overhead, small enough to leave >= ~8 grid steps at very large B (v7x
    megacore balance)."""
    t = -(-batch // 8)                       # ceil(batch / 8)
    t = max(MIN_TILE, min(MAX_TILE, t))
    return ((t + 7) // 8) * 8                # multiple of 8 sublanes


def efx_nn_forward(x, w1, b1, w2, b2):
    """x: (B, D_in); w1: (D_in, H); b1: (1, H); w2: (H, D_out); b2: (1, D_out).
    Returns sigmoid(relu(relu(x@w1 + b1) @ w2 + b2)) as (B, D_out) float32."""
    B, D_in = x.shape
    H = w1.shape[1]
    D_out = w2.shape[1]

    if B <= SINGLE_SHOT_MAX:
        # Overhead-dominated regime: single invocation, no grid, no pipeline
        # prologue/epilogue.  Everything (a few hundred KB max) lives in VMEM.
        vmem = pl.BlockSpec(memory_space=pltpu.MemorySpace.VMEM)
        return pl.pallas_call(
            mlp_kernel,
            out_shape=jax.ShapeDtypeStruct((B, D_out), jnp.float32),
            in_specs=[vmem] * 5,
            out_specs=vmem,
        )(x, w1, b1, w2, b2)

    # Batched regime: 1-D grid over batch tiles.  Weights/biases have constant
    # index_maps so they are DMA'd once and stay VMEM-resident.  No batch
    # padding and no output slicing: cdiv grid + Pallas masking handles the
    # ragged last tile, and the output keeps its true (un-padded) width so the
    # HBM writeback is only the real bytes.
    tile = _row_tile(B)
    grid = (pl.cdiv(B, tile),)
    return pl.pallas_call(
        mlp_kernel,
        out_shape=jax.ShapeDtypeStruct((B, D_out), jnp.float32),
        grid=grid,
        in_specs=[
            pl.BlockSpec((tile, D_in), lambda i: (i, 0)),
            pl.BlockSpec((D_in, H), lambda i: (0, 0)),
            pl.BlockSpec((1, H), lambda i: (0, 0)),
            pl.BlockSpec((H, D_out), lambda i: (0, 0)),
            pl.BlockSpec((1, D_out), lambda i: (0, 0)),
        ],
        out_specs=pl.BlockSpec((tile, D_out), lambda i: (i, 0)),
        compiler_params=pltpu.CompilerParams(
            dimension_semantics=("parallel",)),
    )(x, w1, b1, w2, b2)


efx_nn_forward_jit = jax.jit(efx_nn_forward)


def reference_forward(x, w1, b1, w2, b2):
    h = jnp.maximum(x @ w1 + b1, 0.0)
    y = jnp.maximum(h @ w2 + b2, 0.0)
    return jax.nn.sigmoid(y)


if __name__ == "__main__":
    # cfg = {'input': 32, 'output': 16, 'activation': 'relu+sig+bias'}
    D_in, D_out = 32, 16
    H = 2 * D_in

    key = jax.random.PRNGKey(0)
    kx, k1, kb1, k2, kb2, kx2 = jax.random.split(key, 6)

    # Deterministic params (nn.Linear shapes, transposed to (in, out)).
    bound1 = 1.0 / jnp.sqrt(D_in)
    w1 = jax.random.uniform(k1, (D_in, H), minval=-bound1, maxval=bound1,
                            dtype=jnp.float32)
    b1 = jax.random.uniform(kb1, (1, H), minval=-bound1, maxval=bound1,
                            dtype=jnp.float32)
    bound2 = 1.0 / jnp.sqrt(H)
    w2 = jax.random.uniform(k2, (H, D_out), minval=-bound2, maxval=bound2,
                            dtype=jnp.float32)
    b2 = jax.random.uniform(kb2, (1, D_out), minval=-bound2, maxval=bound2,
                            dtype=jnp.float32)

    # Small batch (module-implied shape): exercises the single-shot, no-grid path.
    B = 8
    x = jax.random.normal(kx, (B, D_in), dtype=jnp.float32)
    out = jax.block_until_ready(efx_nn_forward_jit(x, w1, b1, w2, b2))
    ref = reference_forward(x, w1, b1, w2, b2)
    assert out.shape == (B, D_out)
    # Tolerance covers XLA's default (lower-precision) f32 matmul in the reference.
    assert jnp.allclose(out, ref, atol=2e-3, rtol=2e-3), "small-batch mismatch"

    # Larger batch, NOT a multiple of the row tile: exercises the gridded,
    # weight-resident path with a ragged (masked) last block and no pad/slice.
    B2 = 3000
    x2 = jax.random.normal(kx2, (B2, D_in), dtype=jnp.float32)
    out2 = jax.block_until_ready(efx_nn_forward_jit(x2, w1, b1, w2, b2))
    ref2 = reference_forward(x2, w1, b1, w2, b2)
    assert out2.shape == (B2, D_out)
    assert jnp.allclose(out2, ref2, atol=2e-3, rtol=2e-3), "batched mismatch"

    print("KERNEL_OK")
</pallas_src>

<mosaic_0001>
module attributes {stable_mosaic.version = 11 : i64} {
  func.func @mlp_kernel(%arg0: memref<8x32xf32, #tpu.memory_space<vmem>>, %arg1: memref<32x64xf32, #tpu.memory_space<vmem>>, %arg2: memref<1x64xf32, #tpu.memory_space<vmem>>, %arg3: memref<64x16xf32, #tpu.memory_space<vmem>>, %arg4: memref<1x16xf32, #tpu.memory_space<vmem>>, %arg5: memref<8x16xf32, #tpu.memory_space<vmem>>) attributes {dimension_semantics = [], scalar_prefetch = 0 : i64, scratch_operands = 0 : i64, tpu.core_type = #tpu.core_type<tc>} {
    %c0 = arith.constant 0 : index
    %c0_0 = arith.constant 0 : index
    %0 = vector.load %arg0[%c0, %c0_0] : memref<8x32xf32, #tpu.memory_space<vmem>>, vector<8x32xf32>
    %c0_1 = arith.constant 0 : index
    %c0_2 = arith.constant 0 : index
    %1 = vector.load %arg1[%c0_1, %c0_2] : memref<32x64xf32, #tpu.memory_space<vmem>>, vector<32x64xf32>
    %cst = arith.constant dense<0.000000e+00> : vector<8x64xf32>
    %2 = tpu.matmul %0, %1, %cst {dimension_numbers = #tpu.dot_dimension_numbers<[1], [0], [0], [1], [0, 0, 1, 1], [], []>} : vector<8x32xf32>, vector<32x64xf32>, vector<8x64xf32> -> vector<8x64xf32>
    %c0_3 = arith.constant 0 : index
    %c0_4 = arith.constant 0 : index
    %3 = vector.load %arg2[%c0_3, %c0_4] : memref<1x64xf32, #tpu.memory_space<vmem>>, vector<1x64xf32>
    %4 = vector.broadcast %3 : vector<1x64xf32> to vector<8x64xf32>
    %5 = arith.addf %2, %4 : vector<8x64xf32>
    %cst_5 = arith.constant 0.000000e+00 : f32
    %6 = vector.broadcast %cst_5 : f32 to vector<8x64xf32>
    %7 = arith.maximumf %5, %6 : vector<8x64xf32>
    %c0_6 = arith.constant 0 : index
    %c0_7 = arith.constant 0 : index
    %8 = vector.load %arg3[%c0_6, %c0_7] : memref<64x16xf32, #tpu.memory_space<vmem>>, vector<64x16xf32>
    %cst_8 = arith.constant dense<0.000000e+00> : vector<8x16xf32>
    %9 = tpu.matmul %7, %8, %cst_8 {dimension_numbers = #tpu.dot_dimension_numbers<[1], [0], [0], [1], [0, 0, 1, 1], [], []>} : vector<8x64xf32>, vector<64x16xf32>, vector<8x16xf32> -> vector<8x16xf32>
    %c0_9 = arith.constant 0 : index
    %c0_10 = arith.constant 0 : index
    %10 = vector.load %arg4[%c0_9, %c0_10] : memref<1x16xf32, #tpu.memory_space<vmem>>, vector<1x16xf32>
    %11 = vector.broadcast %10 : vector<1x16xf32> to vector<8x16xf32>
    %12 = arith.addf %9, %11 : vector<8x16xf32>
    %cst_11 = arith.constant 0.000000e+00 : f32
    %13 = vector.broadcast %cst_11 : f32 to vector<8x16xf32>
    %14 = arith.maximumf %12, %13 : vector<8x16xf32>
    %cst_12 = arith.constant 0.000000e+00 : f32
    %15 = vector.broadcast %cst_12 : f32 to vector<8x16xf32>
    %16 = arith.subf %15, %14 : vector<8x16xf32>
    %17 = math.exp %16 : vector<8x16xf32>
    %cst_13 = arith.constant 1.000000e+00 : f32
    %18 = vector.broadcast %cst_13 : f32 to vector<8x16xf32>
    %19 = arith.addf %18, %17 : vector<8x16xf32>
    %cst_14 = arith.constant 1.000000e+00 : f32
    %20 = vector.broadcast %cst_14 : f32 to vector<8x16xf32>
    %21 = arith.divf %20, %19 : vector<8x16xf32>
    %c0_15 = arith.constant 0 : index
    %c0_16 = arith.constant 0 : index
    %22 = vector.load %arg5[%c0_15, %c0_16] : memref<8x16xf32, #tpu.memory_space<vmem>>, vector<8x16xf32>
    tpu.vector_store %arg5[%c0_15, %c0_16], %21 {strides = array<i32>} : memref<8x16xf32, #tpu.memory_space<vmem>>, vector<8x16xf32>,
    return
  }
}

</mosaic_0001>

<bundles_post_ra>
// kernel: efx_nn_forward.1
= control target key start
LH: loop header
LB: loop body
LE: loop exit
PB: predicated region body
PF: predicated region fallthrough
CT: control target
= control target key end

     0   :  { %s243_s0 = inlined_call_operand.vmem [shape: f32[8,32], index: 0, kind: input, shape index: {}]   ;;  %s244_s1 = inlined_call_operand.vmem [shape: f32[32,64], index: 1, kind: input, shape index: {}]   ;;  %s245_s2 = inlined_call_operand.vmem [shape: f32[1,64], index: 2, kind: input, shape index: {}]   ;;  %s246_s3 = inlined_call_operand.vmem [shape: f32[64,16], index: 3, kind: input, shape index: {}]   ;;  %s247_s4 = inlined_call_operand.vmem [shape: f32[1,16], index: 4, kind: input, shape index: {}]   ;;  %s248_s5 = inlined_call_operand.hbm [shape: f32[8,16], index: 5, kind: output, shape index: {}]  }
   0x1   :  { %v25_v0 = vld [vmem:[%s244_s1 + $0x18] sm:$0xff]  ;;  %v24_v1 = vld [vmem:[%s244_s1 + $0x10] sm:$0xff]  ;;  %v23_v3 = vld [vmem:[%s244_s1 + $0x8] sm:$0xff] }
   0x2   :  { %46 = vmatpush.msra.mxu0 %v25_v0  ;;  %v62_v2 = vld [vmem:[%s246_s3 + $0x38] sm:$0xff]  ;;  %v61_v4 = vld [vmem:[%s246_s3 + $0x30] sm:$0xff]  ;;  %v60_v5 = vld [vmem:[%s246_s3 + $0x28] sm:$0xff] }
   0x3   :  { %79 = vmatpush.msra.mxu1 %v62_v2  ;;  %v22_v6 = vld [vmem:[%s244_s1] sm:$0xff] }
   0x4   :  { %47 = vmatpush.msra.mxu0 %v24_v1 }
   0x5   :  { %80 = vmatpush.msra.mxu1 %v61_v4 }
   0x6   :  { %10 = vsyncpa [#allocation3], 0  ;;  %48 = vmatpush.msra.mxu0 %v23_v3  ;;  %v21_v7 = vld [vmem:[%s243_s0] sm:$0xff]  ;;  %vm30_vm0 = vcmask 261120   ;;  %v58_v9 = vld [vmem:[%s246_s3 + $0x18] sm:$0xff]  ;;  %vm67_vm1 = vcmask 523264  }
   0x7   :  { %v59_v8 = vld [vmem:[%s246_s3 + $0x20] sm:$0xff]  ;;  %81 = vmatpush.msra.mxu1 %v60_v5  ;;  %v57_v10 = vld [vmem:[%s246_s3 + $0x10] sm:$0xff]  ;;  %v56_v11 = vld [vmem:[%s246_s3 + $0x8] sm:$0xff]  ;;  %s120_s22 = sshll.u32 %s248_s5, 4  ;;  %vm111_vm5 = vcmask 130048   ;;  %s121_s22 = int_to_ptr.hbm [resolvable:$true] %s120_s22 }
   0x8   :  { %49 = vmatpush.msra.mxu0 %v22_v6  ;;  %v55_v12 = vld [vmem:[%s246_s3] sm:$0xff] }
   0x9   :  { %129 = vmatmul.msk.f32.vlgmr.msra.gmra.mxu0 %vm30_vm0, %v21_v7  ;;  %82 = vmatpush.msra.mxu1 %v59_v8  ;;  %v132_v13 = vld [vmem:[%s245_s2] ss:$0 sm:$0xff]  ;;  %s164_s2 = smov [#allocation2]  }
   0xa   :  { %v133_v17 = vld [vmem:[%s247_s4] ss:$0 sm:$0xff]  ;;  %s118_s3 = sshll.u32 %s164_s2, 4  ;;  %s119_s3 = int_to_ptr.vmem [resolvable:$true] %s118_s3 }
   0xb   :  { %83 = vmatpush.msra.mxu1 %v58_v9 }
   0xd   :  { %84 = vmatpush.msra.mxu1 %v57_v10 }
   0xf   :  { %85 = vmatpush.msra.mxu1 %v56_v11 }
  0x11   :  { %86 = vmatpush.msra.mxu1 %v55_v12 }
  0x86   :  { %v51_v14 = vpop.f32.mrf.mxu0 }
  0x87   :  { %v52_v15 = vadd.f32 %v132_v13, %v51_v14 }
  0x89   :  { %v54_v16 = vmax.f32 %v52_v15, 0.0 }
  0x8b   :  { %130 = vmatmul.msk.f32.vlgmr.msra.gmra.mxu1 %vm67_vm1, %v54_v16 }
 0x108   :  { %v88_v18 = vpop.f32.mrf.mxu1 }
 0x109   :  { %v89_v19 = vadd.f32 %v133_v17, %v88_v18 }
 0x10b   :  { %v91_v20 = vmax.f32 %v89_v19, 0.0 }
 0x10d   :  { %v92_v21 = vsub.f32 0.0, %v91_v20 }
 0x10f   :  { %v93_v22 = vmul.f32 1.442695, %v92_v21 }
 0x111   :  { %134 = vpow2.f32 %v93_v22 }
 0x117   :  { %v135_v23 = vpop.eup %134 }
 0x118   :  { %v95_v24 = vadd.f32 1.0, %v135_v23 }
 0x11a   :  { %136 = vrcp.f32 %v95_v24  ;;  %v107_v28 = vand.u32 2147483648, %v95_v24  ;;  %v105_v30 = vand.u32 2147483647, %v95_v24  ;;  %vm101_vm3 = vweird.f32 %v95_v24 }
 0x11c   :  { %v108_v32 = vor.u32 1.1754944e-38, %v107_v28  ;;  %vm106_vm6 = vcmp.eq.f32.partialorder %v105_v30, 8.507059e+37 }
 0x120   :  { %v137_v25 = vpop.eup %136 }
 0x121   :  { %v97_v26 = vmul.f32 %v137_v25, %v95_v24  ;;  %vm102_vm2 = vweird.f32 %v137_v25 }
 0x122   :  { %vm103_vm4 = vmor %vm101_vm3, %vm102_vm2 }
 0x123   :  { %v98_v27 = vsub.f32 1.0, %v97_v26 }
 0x125   :  { %v99_v29 = vmul.f32 %v137_v25, %v98_v27 }
 0x127   :  { %v100_v31 = vadd.f32 %v137_v25, %v99_v29 }
 0x129   :  { %v104_v33 = vsel %vm103_vm4, %v137_v25, %v100_v31 }
 0x12a   :  { %v109_v34 = vsel %vm106_vm6, %v108_v32, %v104_v33 }
 0x12b   :  { %112 = vst.msk [vmem:[#allocation2] sm:$0xff] %vm111_vm5, %v109_v34 }
 0x12c   :  { %123 = dma.vmem_to_hbm [thread:$0]  %s119_s3, 128, %s121_s22, [#allocation3]  }
 0x12d   :  { %162 = dma.done.wait [#allocation3], 128  }
 0x12e   :  { %163 = vsyncadd [#allocation3], 4294967168 }
 0x12f   :  { %128 = vsyncpa [#allocation3], 1 }

</bundles_post_ra>
